<compile_context>
chip_gen: v7x
topology: tpu7x:2x2x1
jax: 0.10.0
libtpu: 0.0.40
codegen_flags: <defaults>
</compile_context>

<pallas_src>
import functools

import jax
import jax.numpy as jnp
from jax import lax
from jax.experimental import pallas as pl
from jax.experimental.pallas import tpu as pltpu

# ---------------- model hyper-parameters (small, tile-friendly) ----------------
OUTPUT_DIM = 128   # vocab size V
EMB_DIM    = 32    # E
HID_DIM    = 32    # H  -> 4H = 128 (lane-width friendly)
N_LAYERS   = 2
BATCH      = 8     # B  (sublane friendly)
DROPOUT    = 0.1   # defined in the module but identity in eval mode
TT_DEFAULT = 32    # timesteps per grid block (fc M-dim: 16 is a full pass on v5e,
                   # 32 on v6e/v7x; 32 is fine on all generations)


def decoder_kernel(gx_ref, state_in_ref,
                   whh0_ref, wih1_ref, whh1_ref, b1_ref, wfc_ref, bfc_ref,
                   pred_ref, state_ref, hbuf_ref,
                   *, total_steps, need_mask):
    """One time block (TT steps) per grid iteration; packed LSTM state is resident."""
    tt, b, g4 = gx_ref.shape          # (TT, B, 4H)
    h = g4 // 4
    blk = pl.program_id(0)

    # Initialize the resident packed state block from the (aliased) input once.
    @pl.when(blk == 0)
    def _():
        state_ref[...] = state_in_ref[...]

    # Loop-invariant weight loads / bias broadcasts, hoisted above the recurrence.
    w_hh0 = whh0_ref[...]                                     # (H, 4H)
    w_ih1 = wih1_ref[...]                                     # (H, 4H)
    w_hh1 = whh1_ref[...]                                     # (H, 4H)
    b1 = jnp.broadcast_to(b1_ref[...], (b, g4))               # (B, 4H)

    state = state_ref[...]                                    # (B, 4H): [h0|c0|h1|c1]
    h0 = state[:, 0 * h:1 * h]
    c0 = state[:, 1 * h:2 * h]
    h1 = state[:, 2 * h:3 * h]
    c1 = state[:, 3 * h:4 * h]

    def lstm_combine(z, c_prev):
        s = jax.nn.sigmoid(z)                                 # one full-vreg EUP pass
        i = s[:, 0 * h:1 * h]
        f = s[:, 1 * h:2 * h]
        o = s[:, 3 * h:4 * h]
        gg = jnp.tanh(z[:, 2 * h:3 * h])
        c_new = f * c_prev + i * gg
        h_new = o * jnp.tanh(c_new)
        return h_new, c_new

    # Fully unrolled inner time loop (TT is static); carries stay in registers.
    for step in range(tt):
        # Layer 0: x-gates (emb @ w_ih0 + b0) precomputed outside the recurrence.
        z0 = gx_ref[step] + jnp.dot(h0, w_hh0, preferred_element_type=jnp.float32)
        h0n, c0n = lstm_combine(z0, c0)

        # Layer 1 (inter-layer LSTM dropout is identity in eval mode).
        z1 = (jnp.dot(h0n, w_ih1, preferred_element_type=jnp.float32)
              + jnp.dot(h1, w_hh1, preferred_element_type=jnp.float32) + b1)
        h1n, c1n = lstm_combine(z1, c1)

        hbuf_ref[step] = h1n                                  # stash for batched fc_out

        if need_mask:
            # Tail-of-sequence guard: padded steps must not advance the state.
            valid = (blk * tt + step) < total_steps
            h0n = jnp.where(valid, h0n, h0)
            c0n = jnp.where(valid, c0n, c0)
            h1n = jnp.where(valid, h1n, h1)
            c1n = jnp.where(valid, c1n, c1)

        h0, c0, h1, c1 = h0n, c0n, h1n, c1n

    # Single lane-dense (B, 4H) state writeback per time block.
    state_ref[...] = jnp.concatenate([h0, c0, h1, c1], axis=-1)

    # Batched fc_out over the whole time block: (TT*B, H) @ (H, V), off the serial chain.
    h_all = hbuf_ref[...].reshape(tt * b, h)
    logits = jnp.dot(h_all, wfc_ref[...], preferred_element_type=jnp.float32) + bfc_ref[...]
    pred_ref[...] = logits.reshape(tt, b, logits.shape[-1])


def rnn_decoder_sequence(tokens_seq, hidden_state, params, tt=TT_DEFAULT):
    """Teacher-forced multi-step decode. tokens_seq: (T, B) int32.
    Returns (predictions (T, B, V), (h (L, B, H), c (L, B, H)))."""
    h0, c0 = hidden_state
    T, B = tokens_seq.shape
    H = HID_DIM
    V = OUTPUT_DIM

    tt = max(1, min(int(tt), int(T)))
    nb = pl.cdiv(T, tt)
    T_pad = nb * tt
    need_mask = (T_pad != T)

    # --- teacher-forced x-path is parallel across time: precompute layer-0 input
    #     gates (emb @ w_ih0 + b0) for the whole sequence as one XLA matmul ---
    emb_x = params["embedding"][tokens_seq.astype(jnp.int32)]                # (T, B, E)
    gx0 = jnp.einsum("tbe,eg->tbg", emb_x, params["w_ih0"],
                     precision=lax.Precision.HIGHEST) + params["b0"]         # (T, B, 4H)
    gx0 = gx0.astype(jnp.float32)
    if need_mask:
        gx0 = jnp.pad(gx0, ((0, T_pad - T), (0, 0), (0, 0)))

    # Pack the state lane-dense: (B, 4H) = [h_l0 | c_l0 | h_l1 | c_l1].
    packed = jnp.concatenate([h0[0], c0[0], h0[1], c0[1]], axis=-1).astype(jnp.float32)

    kernel = functools.partial(decoder_kernel, total_steps=T, need_mask=need_mask)
    const2 = lambda g: (0, 0)

    preds, state_out = pl.pallas_call(
        kernel,
        grid=(nb,),
        in_specs=[
            pl.BlockSpec((tt, B, 4 * H), lambda g: (g, 0, 0)),     # precomputed x-gates
            pl.BlockSpec((B, 4 * H), const2),                      # packed state in
            pl.BlockSpec((H, 4 * H), const2),                      # w_hh0
            pl.BlockSpec((H, 4 * H), const2),                      # w_ih1
            pl.BlockSpec((H, 4 * H), const2),                      # w_hh1
            pl.BlockSpec((1, 4 * H), const2),                      # b1
            pl.BlockSpec((H, V), const2),                          # w_fc
            pl.BlockSpec((1, V), const2),                          # b_fc
        ],
        out_specs=(
            pl.BlockSpec((tt, B, V), lambda g: (g, 0, 0)),         # predictions
            pl.BlockSpec((B, 4 * H), const2),                      # packed state out
        ),
        out_shape=(
            jax.ShapeDtypeStruct((T_pad, B, V), jnp.float32),
            jax.ShapeDtypeStruct((B, 4 * H), jnp.float32),
        ),
        scratch_shapes=[pltpu.VMEM((tt, B, H), jnp.float32)],      # per-step h1 stash
        input_output_aliases={1: 1},                               # in-place state update
        compiler_params=pltpu.CompilerParams(
            dimension_semantics=("arbitrary",)),                   # recurrence is serial
    )(gx0, packed,
      params["w_hh0"], params["w_ih1"], params["w_hh1"],
      params["b1"], params["w_fc"], params["b_fc"])

    preds = preds[:T]
    h = jnp.stack([state_out[:, 0 * H:1 * H], state_out[:, 2 * H:3 * H]])
    c = jnp.stack([state_out[:, 1 * H:2 * H], state_out[:, 3 * H:4 * H]])
    return preds, (h, c)


def rnn_decoder_forward(tokens, hidden_state, params):
    """Module-equivalent single-step forward. tokens: (B,) int32."""
    preds, new_state = rnn_decoder_sequence(tokens[None, :], hidden_state, params)
    return preds[0], new_state


# ----------------------- parameters -----------------------
def make_params(key):
    """Deterministic synthetic parameters (PyTorch-style uniform init), f32."""
    ks = jax.random.split(key, 11)
    bound = 1.0 / jnp.sqrt(HID_DIM)
    u = lambda k, shape: jax.random.uniform(k, shape, jnp.float32, -bound, bound)
    return {
        "embedding": jax.random.normal(ks[0], (OUTPUT_DIM, EMB_DIM), jnp.float32),
        "w_ih0": u(ks[1], (EMB_DIM, 4 * HID_DIM)),
        "w_hh0": u(ks[2], (HID_DIM, 4 * HID_DIM)),
        "b0":    u(ks[3], (1, 4 * HID_DIM)) + u(ks[4], (1, 4 * HID_DIM)),   # b_ih + b_hh
        "w_ih1": u(ks[5], (HID_DIM, 4 * HID_DIM)),
        "w_hh1": u(ks[6], (HID_DIM, 4 * HID_DIM)),
        "b1":    u(ks[7], (1, 4 * HID_DIM)) + u(ks[8], (1, 4 * HID_DIM)),
        "w_fc":  u(ks[9], (HID_DIM, OUTPUT_DIM)),
        "b_fc":  u(ks[10], (1, OUTPUT_DIM)),
    }


# ----------------------- pure-JAX reference (for checking) -----------------------
def rnn_decoder_reference(tokens, hidden_state, p):
    """Single step, f32 math at HIGHEST precision (gate order i|f|g|o, PyTorch LSTM)."""
    hi = lax.Precision.HIGHEST
    h0, c0 = hidden_state
    H = HID_DIM
    x = p["embedding"][tokens]
    hs, cs = [], []
    layers = [(p["w_ih0"], p["w_hh0"], p["b0"]),
              (p["w_ih1"], p["w_hh1"], p["b1"])]
    for l, (w_ih, w_hh, b) in enumerate(layers):
        gates = jnp.dot(x, w_ih, precision=hi) + jnp.dot(h0[l], w_hh, precision=hi) + b
        i = jax.nn.sigmoid(gates[:, 0 * H:1 * H])
        f = jax.nn.sigmoid(gates[:, 1 * H:2 * H])
        g = jnp.tanh(gates[:, 2 * H:3 * H])
        o = jax.nn.sigmoid(gates[:, 3 * H:4 * H])
        c_new = f * c0[l] + i * g
        h_new = o * jnp.tanh(c_new)
        hs.append(h_new); cs.append(c_new)
        x = h_new
    pred = jnp.dot(x, p["w_fc"], precision=hi) + p["b_fc"]
    return pred, (jnp.stack(hs), jnp.stack(cs))


if __name__ == "__main__":
    key = jax.random.PRNGKey(0)
    k_tok, k_h, k_c, k_p, k_seq = jax.random.split(key, 5)

    params = make_params(k_p)

    tokens = jax.random.randint(k_tok, (BATCH,), 0, OUTPUT_DIM, dtype=jnp.int32)
    h0 = jax.random.normal(k_h, (N_LAYERS, BATCH, HID_DIM), jnp.float32)
    c0 = jax.random.normal(k_c, (N_LAYERS, BATCH, HID_DIM), jnp.float32)

    # ---- single-step module forward (T = 1, TT collapses to 1) ----
    step_fn = jax.jit(rnn_decoder_forward)
    pred, (h1, c1) = step_fn(tokens, (h0, c0), params)
    jax.block_until_ready((pred, h1, c1))

    ref_pred, (rh1, rc1) = rnn_decoder_reference(tokens, (h0, c0), params)
    assert jnp.allclose(pred, ref_pred, atol=1e-2, rtol=1e-2)
    assert jnp.allclose(h1, rh1, atol=1e-2, rtol=1e-2)
    assert jnp.allclose(c1, rc1, atol=1e-2, rtol=1e-2)

    # ---- multi-step teacher-forced decode: exercises time blocking + tail masking ----
    T = 40   # not a multiple of TT=32 -> 2 grid blocks, masked tail
    tok_seq = jax.random.randint(k_seq, (T, BATCH), 0, OUTPUT_DIM, dtype=jnp.int32)
    seq_fn = jax.jit(rnn_decoder_sequence)
    preds_seq, (hT, cT) = seq_fn(tok_seq, (h0, c0), params)
    jax.block_until_ready((preds_seq, hT, cT))

    state = (h0, c0)
    ref_list = []
    for t in range(T):
        p_t, state = rnn_decoder_reference(tok_seq[t], state, params)
        ref_list.append(p_t)
    ref_seq = jnp.stack(ref_list)
    assert jnp.allclose(preds_seq, ref_seq, atol=3e-2, rtol=3e-2)
    assert jnp.allclose(hT, state[0], atol=3e-2, rtol=3e-2)
    assert jnp.allclose(cT, state[1], atol=3e-2, rtol=3e-2)

    # TODO(synk): nn.Dropout / inter-layer LSTM dropout are training-only and are
    # identity in eval mode, so they are intentionally omitted.
    print("KERNEL_OK")
</pallas_src>

<mosaic_0001>
module attributes {stable_mosaic.version = 11 : i64} {
  func.func @decoder_kernel(%arg0: i32, %arg1: memref<1x8x128xf32, #tpu.memory_space<vmem>>, %arg2: memref<8x128xf32, #tpu.memory_space<vmem>>, %arg3: memref<32x128xf32, #tpu.memory_space<vmem>>, %arg4: memref<32x128xf32, #tpu.memory_space<vmem>>, %arg5: memref<32x128xf32, #tpu.memory_space<vmem>>, %arg6: memref<1x128xf32, #tpu.memory_space<vmem>>, %arg7: memref<32x128xf32, #tpu.memory_space<vmem>>, %arg8: memref<1x128xf32, #tpu.memory_space<vmem>>, %arg9: memref<1x8x128xf32, #tpu.memory_space<vmem>>, %arg10: memref<8x128xf32, #tpu.memory_space<vmem>>, %arg11: memref<1x8x32xf32, #tpu.memory_space<vmem>>) attributes {dimension_semantics = [#tpu.dimension_semantics<arbitrary>], iteration_bounds = array<i64: 1>, scalar_prefetch = 0 : i64, scratch_operands = 1 : i64, tpu.core_type = #tpu.core_type<tc>, window_params = [{transform_indices = @transform_0, window_bounds = array<i64: 1, 8, 128>}, {pipeline_mode = #tpu.pipeline_mode<synchronous>, transform_indices = @transform_1, window_bounds = array<i64: 8, 128>}, {pipeline_mode = #tpu.pipeline_mode<synchronous>, transform_indices = @transform_2, window_bounds = array<i64: 32, 128>}, {pipeline_mode = #tpu.pipeline_mode<synchronous>, transform_indices = @transform_3, window_bounds = array<i64: 32, 128>}, {pipeline_mode = #tpu.pipeline_mode<synchronous>, transform_indices = @transform_4, window_bounds = array<i64: 32, 128>}, {pipeline_mode = #tpu.pipeline_mode<synchronous>, transform_indices = @transform_5, window_bounds = array<i64: 1, 128>}, {pipeline_mode = #tpu.pipeline_mode<synchronous>, transform_indices = @transform_6, window_bounds = array<i64: 32, 128>}, {pipeline_mode = #tpu.pipeline_mode<synchronous>, transform_indices = @transform_7, window_bounds = array<i64: 1, 128>}, {transform_indices = @transform_8, window_bounds = array<i64: 1, 8, 128>}, {pipeline_mode = #tpu.pipeline_mode<synchronous>, transform_indices = @transform_9, window_bounds = array<i64: 8, 128>}]} {
    %c0_i32 = arith.constant 0 : i32
    %0 = arith.cmpi eq, %arg0, %c0_i32 : i32
    %1 = arith.extui %0 : i1 to i32
    %c0_i32_0 = arith.constant 0 : i32
    %2 = arith.cmpi ne, %1, %c0_i32_0 : i32
    scf.if %2 {
      %c0_33 = arith.constant 0 : index
      %c0_34 = arith.constant 0 : index
      %66 = vector.load %arg2[%c0_33, %c0_34] : memref<8x128xf32, #tpu.memory_space<vmem>>, vector<8x128xf32>
      %c0_35 = arith.constant 0 : index
      %c0_36 = arith.constant 0 : index
      %67 = vector.load %arg10[%c0_35, %c0_36] : memref<8x128xf32, #tpu.memory_space<vmem>>, vector<8x128xf32>
      tpu.vector_store %arg10[%c0_35, %c0_36], %66 {strides = array<i32>} : memref<8x128xf32, #tpu.memory_space<vmem>>, vector<8x128xf32>,
    } else {
    }
    %c0 = arith.constant 0 : index
    %c0_1 = arith.constant 0 : index
    %3 = vector.load %arg3[%c0, %c0_1] : memref<32x128xf32, #tpu.memory_space<vmem>>, vector<32x128xf32>
    %c0_2 = arith.constant 0 : index
    %c0_3 = arith.constant 0 : index
    %4 = vector.load %arg4[%c0_2, %c0_3] : memref<32x128xf32, #tpu.memory_space<vmem>>, vector<32x128xf32>
    %c0_4 = arith.constant 0 : index
    %c0_5 = arith.constant 0 : index
    %5 = vector.load %arg5[%c0_4, %c0_5] : memref<32x128xf32, #tpu.memory_space<vmem>>, vector<32x128xf32>
    %c0_6 = arith.constant 0 : index
    %c0_7 = arith.constant 0 : index
    %6 = vector.load %arg6[%c0_6, %c0_7] : memref<1x128xf32, #tpu.memory_space<vmem>>, vector<1x128xf32>
    %7 = vector.shape_cast %6 : vector<1x128xf32> to vector<1x128xf32>
    %8 = vector.broadcast %7 : vector<1x128xf32> to vector<8x128xf32>
    %c0_8 = arith.constant 0 : index
    %c0_9 = arith.constant 0 : index
    %9 = vector.load %arg10[%c0_8, %c0_9] : memref<8x128xf32, #tpu.memory_space<vmem>>, vector<8x128xf32>
    %10 = vector.extract_strided_slice %9 {offsets = [0, 0], sizes = [8, 32], strides = [1, 1]} : vector<8x128xf32> to vector<8x32xf32>
    %11 = vector.extract_strided_slice %9 {offsets = [0, 32], sizes = [8, 32], strides = [1, 1]} : vector<8x128xf32> to vector<8x32xf32>
    %12 = vector.extract_strided_slice %9 {offsets = [0, 64], sizes = [8, 32], strides = [1, 1]} : vector<8x128xf32> to vector<8x32xf32>
    %13 = vector.extract_strided_slice %9 {offsets = [0, 96], sizes = [8, 32], strides = [1, 1]} : vector<8x128xf32> to vector<8x32xf32>
    %c0_10 = arith.constant 0 : index
    %c0_11 = arith.constant 0 : index
    %c0_12 = arith.constant 0 : index
    %14 = vector.load %arg1[%c0_10, %c0_11, %c0_12] : memref<1x8x128xf32, #tpu.memory_space<vmem>>, vector<1x8x128xf32>
    %15 = vector.shape_cast %14 : vector<1x8x128xf32> to vector<8x128xf32>
    %cst = arith.constant dense<0.000000e+00> : vector<8x128xf32>
    %16 = tpu.matmul %10, %3, %cst {dimension_numbers = #tpu.dot_dimension_numbers<[1], [0], [0], [1], [0, 0, 1, 1], [], []>} : vector<8x32xf32>, vector<32x128xf32>, vector<8x128xf32> -> vector<8x128xf32>
    %17 = arith.addf %15, %16 : vector<8x128xf32>
    %18 = arith.negf %17 : vector<8x128xf32>
    %19 = math.exp %18 : vector<8x128xf32>
    %cst_13 = arith.constant 1.000000e+00 : f32
    %20 = vector.broadcast %cst_13 : f32 to vector<8x128xf32>
    %21 = arith.addf %20, %19 : vector<8x128xf32>
    %22 = arith.divf %20, %21 : vector<8x128xf32>
    %23 = vector.extract_strided_slice %22 {offsets = [0, 0], sizes = [8, 32], strides = [1, 1]} : vector<8x128xf32> to vector<8x32xf32>
    %24 = vector.extract_strided_slice %22 {offsets = [0, 32], sizes = [8, 32], strides = [1, 1]} : vector<8x128xf32> to vector<8x32xf32>
    %25 = vector.extract_strided_slice %22 {offsets = [0, 96], sizes = [8, 32], strides = [1, 1]} : vector<8x128xf32> to vector<8x32xf32>
    %26 = vector.extract_strided_slice %17 {offsets = [0, 64], sizes = [8, 32], strides = [1, 1]} : vector<8x128xf32> to vector<8x32xf32>
    %27 = math.tanh %26 : vector<8x32xf32>
    %28 = arith.mulf %24, %11 : vector<8x32xf32>
    %29 = arith.mulf %23, %27 : vector<8x32xf32>
    %30 = arith.addf %28, %29 : vector<8x32xf32>
    %31 = math.tanh %30 : vector<8x32xf32>
    %32 = arith.mulf %25, %31 : vector<8x32xf32>
    %cst_14 = arith.constant dense<0.000000e+00> : vector<8x128xf32>
    %33 = tpu.matmul %32, %4, %cst_14 {dimension_numbers = #tpu.dot_dimension_numbers<[1], [0], [0], [1], [0, 0, 1, 1], [], []>} : vector<8x32xf32>, vector<32x128xf32>, vector<8x128xf32> -> vector<8x128xf32>
    %cst_15 = arith.constant dense<0.000000e+00> : vector<8x128xf32>
    %34 = tpu.matmul %12, %5, %cst_15 {dimension_numbers = #tpu.dot_dimension_numbers<[1], [0], [0], [1], [0, 0, 1, 1], [], []>} : vector<8x32xf32>, vector<32x128xf32>, vector<8x128xf32> -> vector<8x128xf32>
    %35 = arith.addf %33, %34 : vector<8x128xf32>
    %36 = arith.addf %35, %8 : vector<8x128xf32>
    %37 = arith.negf %36 : vector<8x128xf32>
    %38 = math.exp %37 : vector<8x128xf32>
    %cst_16 = arith.constant 1.000000e+00 : f32
    %39 = vector.broadcast %cst_16 : f32 to vector<8x128xf32>
    %40 = arith.addf %39, %38 : vector<8x128xf32>
    %41 = arith.divf %39, %40 : vector<8x128xf32>
    %42 = vector.extract_strided_slice %41 {offsets = [0, 0], sizes = [8, 32], strides = [1, 1]} : vector<8x128xf32> to vector<8x32xf32>
    %43 = vector.extract_strided_slice %41 {offsets = [0, 32], sizes = [8, 32], strides = [1, 1]} : vector<8x128xf32> to vector<8x32xf32>
    %44 = vector.extract_strided_slice %41 {offsets = [0, 96], sizes = [8, 32], strides = [1, 1]} : vector<8x128xf32> to vector<8x32xf32>
    %45 = vector.extract_strided_slice %36 {offsets = [0, 64], sizes = [8, 32], strides = [1, 1]} : vector<8x128xf32> to vector<8x32xf32>
    %46 = math.tanh %45 : vector<8x32xf32>
    %47 = arith.mulf %43, %13 : vector<8x32xf32>
    %48 = arith.mulf %42, %46 : vector<8x32xf32>
    %49 = arith.addf %47, %48 : vector<8x32xf32>
    %50 = math.tanh %49 : vector<8x32xf32>
    %51 = arith.mulf %44, %50 : vector<8x32xf32>
    %c0_17 = arith.constant 0 : index
    %c0_18 = arith.constant 0 : index
    %c0_19 = arith.constant 0 : index
    %52 = vector.load %arg11[%c0_17, %c0_18, %c0_19] : memref<1x8x32xf32, #tpu.memory_space<vmem>>, vector<1x8x32xf32>
    %53 = vector.shape_cast %52 : vector<1x8x32xf32> to vector<8x32xf32>
    %54 = vector.shape_cast %51 : vector<8x32xf32> to vector<1x8x32xf32>
    tpu.vector_store %arg11[%c0_17, %c0_18, %c0_19], %54 {strides = array<i32>} : memref<1x8x32xf32, #tpu.memory_space<vmem>>, vector<1x8x32xf32>,
    %55 = tpu.concatenate %32, %30, %51, %49 in 1 : vector<8x32xf32>, vector<8x32xf32>, vector<8x32xf32>, vector<8x32xf32> -> vector<8x128xf32>
    %c0_20 = arith.constant 0 : index
    %c0_21 = arith.constant 0 : index
    %56 = vector.load %arg10[%c0_20, %c0_21] : memref<8x128xf32, #tpu.memory_space<vmem>>, vector<8x128xf32>
    tpu.vector_store %arg10[%c0_20, %c0_21], %55 {strides = array<i32>} : memref<8x128xf32, #tpu.memory_space<vmem>>, vector<8x128xf32>,
    %c0_22 = arith.constant 0 : index
    %c0_23 = arith.constant 0 : index
    %c0_24 = arith.constant 0 : index
    %57 = vector.load %arg11[%c0_22, %c0_23, %c0_24] : memref<1x8x32xf32, #tpu.memory_space<vmem>>, vector<1x8x32xf32>
    %58 = vector.shape_cast %57 : vector<1x8x32xf32> to vector<8x32xf32>
    %c0_25 = arith.constant 0 : index
    %c0_26 = arith.constant 0 : index
    %59 = vector.load %arg7[%c0_25, %c0_26] : memref<32x128xf32, #tpu.memory_space<vmem>>, vector<32x128xf32>
    %cst_27 = arith.constant dense<0.000000e+00> : vector<8x128xf32>
    %60 = tpu.matmul %58, %59, %cst_27 {dimension_numbers = #tpu.dot_dimension_numbers<[1], [0], [0], [1], [0, 0, 1, 1], [], []>} : vector<8x32xf32>, vector<32x128xf32>, vector<8x128xf32> -> vector<8x128xf32>
    %c0_28 = arith.constant 0 : index
    %c0_29 = arith.constant 0 : index
    %61 = vector.load %arg8[%c0_28, %c0_29] : memref<1x128xf32, #tpu.memory_space<vmem>>, vector<1x128xf32>
    %62 = vector.broadcast %61 : vector<1x128xf32> to vector<8x128xf32>
    %63 = arith.addf %60, %62 : vector<8x128xf32>
    %64 = vector.shape_cast %63 : vector<8x128xf32> to vector<1x8x128xf32>
    %c0_30 = arith.constant 0 : index
    %c0_31 = arith.constant 0 : index
    %c0_32 = arith.constant 0 : index
    %65 = vector.load %arg9[%c0_30, %c0_31, %c0_32] : memref<1x8x128xf32, #tpu.memory_space<vmem>>, vector<1x8x128xf32>
    tpu.vector_store %arg9[%c0_30, %c0_31, %c0_32], %64 {strides = array<i32>} : memref<1x8x128xf32, #tpu.memory_space<vmem>>, vector<1x8x128xf32>,
    return
  }
  func.func @transform_0(%arg0: i32) -> (i32, i32, i32) {
    %c0_i32 = arith.constant 0 : i32
    %c0_i32_0 = arith.constant 0 : i32
    %c0_i32_1 = arith.constant 0 : i32
    return %arg0, %c0_i32, %c0_i32_0 : i32, i32, i32
  }
  func.func @transform_1(%arg0: i32) -> (i32, i32) {
    %c0_i32 = arith.constant 0 : i32
    %c0_i32_0 = arith.constant 0 : i32
    %c0_i32_1 = arith.constant 0 : i32
    return %c0_i32, %c0_i32_0 : i32, i32
  }
  func.func @transform_2(%arg0: i32) -> (i32, i32) {
    %c0_i32 = arith.constant 0 : i32
    %c0_i32_0 = arith.constant 0 : i32
    %c0_i32_1 = arith.constant 0 : i32
    return %c0_i32, %c0_i32_0 : i32, i32
  }
  func.func @transform_3(%arg0: i32) -> (i32, i32) {
    %c0_i32 = arith.constant 0 : i32
    %c0_i32_0 = arith.constant 0 : i32
    %c0_i32_1 = arith.constant 0 : i32
    return %c0_i32, %c0_i32_0 : i32, i32
  }
  func.func @transform_4(%arg0: i32) -> (i32, i32) {
    %c0_i32 = arith.constant 0 : i32
    %c0_i32_0 = arith.constant 0 : i32
    %c0_i32_1 = arith.constant 0 : i32
    return %c0_i32, %c0_i32_0 : i32, i32
  }
  func.func @transform_5(%arg0: i32) -> (i32, i32) {
    %c0_i32 = arith.constant 0 : i32
    %c0_i32_0 = arith.constant 0 : i32
    %c0_i32_1 = arith.constant 0 : i32
    return %c0_i32, %c0_i32_0 : i32, i32
  }
  func.func @transform_6(%arg0: i32) -> (i32, i32) {
    %c0_i32 = arith.constant 0 : i32
    %c0_i32_0 = arith.constant 0 : i32
    %c0_i32_1 = arith.constant 0 : i32
    return %c0_i32, %c0_i32_0 : i32, i32
  }
  func.func @transform_7(%arg0: i32) -> (i32, i32) {
    %c0_i32 = arith.constant 0 : i32
    %c0_i32_0 = arith.constant 0 : i32
    %c0_i32_1 = arith.constant 0 : i32
    return %c0_i32, %c0_i32_0 : i32, i32
  }
  func.func @transform_8(%arg0: i32) -> (i32, i32, i32) {
    %c0_i32 = arith.constant 0 : i32
    %c0_i32_0 = arith.constant 0 : i32
    %c0_i32_1 = arith.constant 0 : i32
    return %arg0, %c0_i32, %c0_i32_0 : i32, i32, i32
  }
  func.func @transform_9(%arg0: i32) -> (i32, i32) {
    %c0_i32 = arith.constant 0 : i32
    %c0_i32_0 = arith.constant 0 : i32
    %c0_i32_1 = arith.constant 0 : i32
    return %c0_i32, %c0_i32_0 : i32, i32
  }
}

</mosaic_0001>

<bundles_post_ra>
// kernel: rnn_decoder_forward.1
= control target key start
LH: loop header
LB: loop body
LE: loop exit
PB: predicated region body
PF: predicated region fallthrough
CT: control target
= control target key end

     0   :  { %v599_v3 = vmov 0.0|0.0   ;;  %vm600_vm0 = vmmov 0   ;;  %v601_v6 = vmov 0.0   ;;  %s767_s0 = inlined_call_operand.vmem [shape: f32[1,8,128], index: 0, kind: input, shape index: {}]   ;;  %s768_s1 = inlined_call_operand.vmem [shape: f32[8,128], index: 1, kind: input, shape index: {}, may-alias: {1,9}]   ;;  %s769_s2 = inlined_call_operand.vmem [shape: f32[32,128], index: 2, kind: input, shape index: {}]   ;;  %s770_s3 = inlined_call_operand.vmem [shape: f32[32,128], index: 3, kind: input, shape index: {}]   ;;  %s771_s4 = inlined_call_operand.vmem [shape: f32[32,128], index: 4, kind: input, shape index: {}]   ;;  %s772_s5 = inlined_call_operand.vmem [shape: f32[1,128], index: 5, kind: input, shape index: {}]   ;;  %s773_s6 = inlined_call_operand.vmem [shape: f32[32,128], index: 6, kind: input, shape index: {}]   ;;  %s774_s7 = inlined_call_operand.vmem [shape: f32[1,128], index: 7, kind: input, shape index: {}]   ;;  %s775_s8 = inlined_call_operand.hbm [shape: f32[1,8,128], index: 8, kind: output, shape index: {0}]   ;;  %s776_s9 = inlined_call_operand.vmem [shape: f32[8,128], index: 9, kind: output, shape index: {1}, may-alias: {1,9}]  }
   0x1   :  { %v38_v0 = vld [vmem:[%s769_s2] sm:$0xff]  ;;  %v39_v1 = vld [vmem:[%s769_s2 + $0x8] sm:$0xff]  ;;  %v40_v2 = vld [vmem:[%s769_s2 + $0x10] sm:$0xff]  ;;  %528 = vmatprep.subr.bf16.mxu0 %v599_v3  ;;  %492 = vmatprep.mubr.msk.f32.mxu0 %vm600_vm0, %v601_v6 }
   0x2   :  { %v529_v4 = vpack.c.bf16 %v39_v1, %v38_v0  ;;  %v41_v5 = vld [vmem:[%s769_s2 + $0x18] sm:$0xff]  ;;  %534 = vmatprep.subr.bf16.mxu1 %v599_v3  ;;  %503 = vmatprep.mubr.msk.f32.mxu1 %vm600_vm0, %v601_v6 }
   0x3   :  { %15 = vsyncpa [#allocation4], 0  ;;  %v532_v7 = vpack.c.bf16 %v41_v5, %v40_v2  ;;  %v36_v8 = vld [vmem:[%s768_s1] sm:$0xff]  ;;  %vm59_vm1 = vcmask 261120   ;;  %s602_s20 = smov 64   ;;  %s603_s1 = smov 32  }
   0x4   :  { %530 = vmatpush3.bf16.msra.mxu0 %v529_v4  ;;  %v58_v9 = vld [vmem:[%s767_s0] sm:$0xff]  ;;  %v47_v24 = vld [vmem:[%s771_s4 + $0x8] sm:$0xff]  ;;  %v48_v28 = vld [vmem:[%s771_s4 + $0x10] sm:$0xff]  ;;  %s604_s21 = smov 96   ;;  %vm347_vm2 = vcmask 523264   ;;  %vm349_vm3 = vcmask 785408  }
   0x5   :  { %531 = vmatprep.subr.bf16.mxu0 %v599_v3  ;;  %v46_v23 = vld [vmem:[%s771_s4] sm:$0xff]  ;;  %v43_v27 = vld [vmem:[%s770_s3 + $0x8] sm:$0xff]  ;;  %v49_v29 = vld [vmem:[%s771_s4 + $0x18] sm:$0xff]  ;;  %s605_s23 = smov [#allocation3]  }
   0x6   :  { %v42_v25 = vld [vmem:[%s770_s3] sm:$0xff]  ;;  %v535_v26 = vpack.c.bf16 %v47_v24, %v46_v23  ;;  %v44_v31 = vld [vmem:[%s770_s3 + $0x10] sm:$0xff]  ;;  %v45_v32 = vld [vmem:[%s770_s3 + $0x18] sm:$0xff]  ;;  %v538_v33 = vpack.c.bf16 %v49_v29, %v48_v28  ;;  %s444_s24 = sshll.u32 %s605_s23, 4  ;;  %s445_s24 = int_to_ptr.vmem [resolvable:$true] %s444_s24 }
   0x7   :  { %v541_v30 = vpack.c.bf16 %v43_v27, %v42_v25  ;;  %v544_v34 = vpack.c.bf16 %v45_v32, %v44_v31  ;;  %v456_v42 = vld [vmem:[%s772_s5] ss:$0 sm:$0xff]  ;;  %v354_v59 = vld [vmem:[%s773_s6 + $0x8] sm:$0xff]  ;;  %v355_v61 = vld [vmem:[%s773_s6 + $0x10] sm:$0xff]  ;;  %s575_s25 = scalar_lea.vmem %s445_s24, 128  ;;  %p580_p1 = scmp.lt.s32.totalorder %s445_s24, %s445_s24 }
   0x8   :  { %533 = vmatpush3.bf16.msra.mxu0 %v532_v7  ;;  %536 = vmatpush3.bf16.msra.mxu1 %v535_v26  ;;  %v353_v58 = vld [vmem:[%s773_s6] sm:$0xff]  ;;  %v356_v62 = vld [vmem:[%s773_s6 + $0x18] sm:$0xff]  ;;  %p576_p0 = scmp.ne.s32.totalorder %s445_s24, %s575_s25  ;;  %p581_p2 = scmp.lt.s32.totalorder %s575_s25, %s575_s25 }
   0x9   :  { %540 = vmatprep.subr.bf16.mxu0 %v599_v3  ;;  %537 = vmatprep.subr.bf16.mxu1 %v599_v3  ;;  %v547_v60 = vpack.c.bf16 %v354_v59, %v353_v58  ;;  %v550_v63 = vpack.c.bf16 %v356_v62, %v355_v61 }
   0xa   :  { %p582_p3 = por %p581_p2, %p580_p1 }
   0xb   :  { %493 = vmatmul.mubr.msk.f32.vlgmr.msra.gmra.mrb[0].mxu0 %vm59_vm1, %v36_v8 }
   0xc   :  { %514 = vmatprep.mubr.msk.f32.mxu0 %vm600_vm0, %v601_v6  ;;  %542 = vmatpush3.bf16.msra.mxu0 %v541_v30  ;;  %p583_p4 = pnand %p582_p3, %p576_p0 }
   0xd   :  { %543 = vmatprep.subr.bf16.mxu0 %v599_v3  ;;  %539 = vmatpush3.bf16.msra.mxu1 %v538_v33 }
   0xe   :  { %546 = vmatprep.subr.bf16.mxu1 %v599_v3 }
  0x10   :  { %545 = vmatpush3.bf16.msra.mxu0 %v544_v34 }
  0xde   :  { %v129_v10 = vpop.f32.mrb[0].mxu0 }
  0xdf   :  { %v133_v11 = vadd.f32 %v129_v10, %v58_v9  ;;  %v494_v12 = vpop.f32.mrb[1].mxu0  ;;  %v462_v9 = vld [vmem:[%s774_s7] ss:$0 sm:$0xff] }
  0xe1   :  { %559 = vtanh.f32 %v133_v11  ;;  %v458_v14 = vmul.f32 -1.442695, %v133_v11 }
  0xe3   :  { %561 = vpow2.f32 %v458_v14 }
  0xeb   :  { %v560_v13 = vpop.eup %559 }
  0xec   :  { %143 = vrot.lane.b32.xlu0 %v560_v13, %s602_s20 }
  0xed   :  { %v562_v15 = vpop.eup %561 }
  0xee   :  { %v137_v16 = vadd.f32 1.0, %v562_v15 }
  0xf0   :  { %563 = vrcp.f32 %v137_v16 }
  0xfa   :  { %v564_v17 = vpop.eup %563 }
  0xfb   :  { %v141_v20 = vmul.f32 %v564_v17, %v36_v8 }
 0x15e   :  { %v144_v18 = vpop.permute.xlu0 %143 }
 0x15f   :  { %v146_v19 = vmul.f32 %v564_v17, %v144_v18 }
 0x161   :  { %148 = vrot.lane.b32.xlu0 %v146_v19, %s603_s1 }
 0x1d3   :  { %v149_v21 = vpop.permute.xlu0 %148 }
 0x1d4   :  { %v687_v22 = vadd.f32 %v149_v21, %v141_v20 }
 0x1d6   :  { %565 = vtanh.f32 %v687_v22 }
 0x1e0   :  { %v566_v35 = vpop.eup %565 }
 0x1e1   :  { %154 = vrot.lane.b32.xlu1 %v566_v35, %s602_s20 }
 0x1e5   :  { %158 = vrot.lane.b32.xlu1 %v36_v8, %s602_s20 }
 0x253   :  { %v155_v36 = vpop.permute.xlu1 %154 }
 0x254   :  { %v157_v37 = vmul.f32 %v564_v17, %v155_v36 }
 0x256   :  { %233 = vrot.lane.b32.xlu0 %v157_v37, %s603_s1 }
 0x257   :  { %v159_v38 = vpop.permute.xlu1 %158 }
 0x258   :  { %504 = vmatmul.mubr.msk.f32.vlgmr.msra.gmra.mrb[0].mxu1 %vm59_vm1, %v159_v38 }
 0x259   :  { %525 = vmatprep.mubr.msk.f32.mxu1 %vm600_vm0, %v601_v6  ;;  %548 = vmatpush3.bf16.msra.mxu1 %v547_v60 }
 0x25a   :  { %549 = vmatprep.subr.bf16.mxu1 %v599_v3 }
 0x25d   :  { %551 = vmatpush3.bf16.msra.mxu1 %v550_v63 }
 0x2c8   :  { %v234_v39 = vpop.permute.xlu0 %233 }
 0x2c9   :  { %515 = vmatmul.mubr.msk.f32.vlgmr.msra.gmra.mrb[2].mxu0 %vm59_vm1, %v234_v39  ;;  %v346_v4 = vsel %vm59_vm1, %v234_v39, %v687_v22 }
 0x32b   :  { %v228_v40 = vpop.f32.mrb[0].mxu1 }
 0x32c   :  { %v505_v41 = vpop.f32.mrb[1].mxu1 }
 0x39c   :  { %v303_v43 = vpop.f32.mrb[2].mxu0 }
 0x39d   :  { %v304_v44 = vadd.f32 %v303_v43, %v228_v40  ;;  %v516_v45 = vpop.f32.mrb[3].mxu0 }
 0x39f   :  { %v307_v46 = vadd.f32 %v456_v42, %v304_v44 }
 0x3a1   :  { %567 = vtanh.f32 %v307_v46  ;;  %v461_v48 = vmul.f32 -1.442695, %v307_v46 }
 0x3a3   :  { %569 = vpow2.f32 %v461_v48 }
 0x3ab   :  { %v568_v47 = vpop.eup %567 }
 0x3ac   :  { %318 = vrot.lane.b32.xlu1 %v568_v47, %s602_s20 }
 0x3ad   :  { %v570_v49 = vpop.eup %569 }
 0x3ae   :  { %v311_v50 = vadd.f32 1.0, %v570_v49 }
 0x3b0   :  { %571 = vrcp.f32 %v311_v50 }
 0x3ba   :  { %v572_v51 = vpop.eup %571 }
 0x3bb   :  { %v316_v54 = vmul.f32 %v572_v51, %v159_v38 }
 0x41e   :  { %v319_v52 = vpop.permute.xlu1 %318 }
 0x41f   :  { %v321_v53 = vmul.f32 %v572_v51, %v319_v52 }
 0x421   :  { %323 = vrot.lane.b32.xlu0 %v321_v53, %s603_s1 }
 0x493   :  { %v324_v55 = vpop.permute.xlu0 %323 }
 0x494   :  { %v326_v56 = vadd.f32 %v324_v55, %v316_v54 }
 0x496   :  { %573 = vtanh.f32 %v326_v56 }
 0x4a0   :  { %v574_v57 = vpop.eup %573 }
 0x4a1   :  { %329 = vrot.lane.b32.xlu1 %v574_v57, %s602_s20 }
 0x513   :  { %v330_v0 = vpop.permute.xlu1 %329 }
 0x514   :  { %v332_v1 = vmul.f32 %v572_v51, %v330_v0 }
 0x516   :  { %339 = vrot.lane.b32.xlu1 %v332_v1, %s604_s21  ;;  %334 = vrot.lane.b32.xlu0 %v332_v1, %s603_s1 }
 0x51a   :  { %343 = vrot.lane.b32.xlu0 %v326_v56, %s602_s20 }
 0x588   :  { %v335_v2 = vpop.permute.xlu0 %334  ;;  %v340_v3 = vpop.permute.xlu1 %339 }
 0x589   :  { %337 = vst.msk [vmem:[#allocation2] sm:$0xff] %vm59_vm1, %v335_v2  ;;  %v348_v5 = vsel %vm347_vm2, %v346_v4, %v340_v3 }
 0x58c   :  { %v344_v6 = vpop.permute.xlu0 %343 }
 0x58d   :  { %v350_v7 = vsel %vm349_vm3, %v348_v5, %v344_v6 }
 0x58e   :  { %351 = vst [vmem:[%s776_s9] sm:$0xff] %v350_v7 }
 0x590   :  { %v352_v8 = vld [vmem:[#allocation2] sm:$0xff] }
 0x591   :  { %526 = vmatmul.mubr.msk.f32.vlgmr.msra.gmra.mrb[2].mxu1 %vm59_vm1, %v352_v8 }
 0x664   :  { %v433_v10 = vpop.f32.mrb[2].mxu1 }
 0x665   :  { %v434_v11 = vadd.f32 %v462_v9, %v433_v10  ;;  %v527_v12 = vpop.f32.mrb[3].mxu1 }
 0x667   :  { %437 = vst [vmem:[#allocation3] sm:$0xff] %v434_v11 }
 0x668   :  { %586 = shalt.err (!%p583_p4)
}
 0x669   :  { %s587_s27 = scalar_lea.hbm %s775_s8, 128 }
 0x66a   :  { %p588_p5 = scmp.ne.s32.totalorder %s775_s8, %s587_s27  ;;  %p591_p6 = scmp.lt.u32.totalorder %s587_s27, %s775_s8 }
 0x66c   :  { %p593_p7 = pnand %p591_p6, %p588_p5 }
 0x66e   :  { %596 = shalt.err (!%p593_p7)
}
 0x66f   :  { %447 = dma.vmem_to_hbm [thread:$0]  %s445_s24, 128, %s775_s8, [#allocation4]  }
 0x670   :  { %597 = dma.done.wait [#allocation4], 128  }
 0x671   :  { %598 = vsyncadd [#allocation4], 4294967168 }
 0x672   :  { %455 = vsyncpa [#allocation4], 1 }

</bundles_post_ra>
